<compile_context>
chip_gen: v7x
topology: tpu7x:2x2x1
jax: 0.10.0
libtpu: 0.0.40
codegen_flags: <defaults>
</compile_context>

<pallas_src>
import functools

import jax
import jax.numpy as jnp
from jax.experimental import pallas as pl
from jax.experimental.pallas import tpu as pltpu


def _round_up(x, m):
    return ((x + m - 1) // m) * m


# ----------------------------------------------------------------------------
# Kernel: shared MLP (2x Linear+ReLU) -> fused [mapper | indicator] head.
# ----------------------------------------------------------------------------
def mapper_block_kernel(x_ref,
                        w1_ref, b1_ref,
                        w2_ref, b2_ref,
                        wh_ref, bh_ref,
                        out_ref):
    cdt = w1_ref.dtype                      # compute dtype for MXU inputs (bf16 default)

    x = x_ref[...].astype(cdt)

    # shared layer 1: Linear + ReLU
    h = jnp.dot(x, w1_ref[...], preferred_element_type=jnp.float32) + b1_ref[...]
    h = jnp.maximum(h, 0.0)

    # shared layer 2: Linear + ReLU (with_last_act=True)
    h = jnp.dot(h.astype(cdt), w2_ref[...],
                preferred_element_type=jnp.float32) + b2_ref[...]
    h = jnp.maximum(h, 0.0)

    # fused heads: single Linear producing [emb | scores | zero-pad] (lane-dense)
    out = jnp.dot(h.astype(cdt), wh_ref[...],
                  preferred_element_type=jnp.float32) + bh_ref[...]
    out_ref[...] = out.astype(out_ref.dtype)


# ----------------------------------------------------------------------------
# One-time parameter packing: fuse heads, zero-pad to lane-dense widths.
# Returns (arrays_only_dict, static_meta_dict) so jit never sees Python ints
# as traced leaves.
# ----------------------------------------------------------------------------
def pack_params(params, compute_dtype=jnp.bfloat16):
    w1, b1 = params["w1"], params["b1"]      # (Din, H1), (1, H1)
    w2, b2 = params["w2"], params["b2"]      # (H1, H2), (1, H2)
    wm, bm = params["wm"], params["bm"]      # (H2, E),  (1, E)
    wi, bi = params["wi"], params["bi"]      # (H2, C),  (1, C)

    d_in, h1 = w1.shape
    _, h2 = w2.shape
    e = wm.shape[1]
    c = wi.shape[1]

    # Keep 128-wide padding (memory-bound kernel: do NOT pad to 256).
    h1p = _round_up(h1, 128)
    h2p = _round_up(h2, 128)
    houtp = _round_up(e + c, 128)

    # shared layer 1
    w1p = jnp.pad(w1, ((0, 0), (0, h1p - h1))).astype(compute_dtype)
    b1p = jnp.pad(b1, ((0, 0), (0, h1p - h1)))              # f32 bias
    # shared layer 2
    w2p = jnp.pad(w2, ((0, h1p - h1), (0, h2p - h2))).astype(compute_dtype)
    b2p = jnp.pad(b2, ((0, 0), (0, h2p - h2)))
    # fused heads  [wm | wi]  (padded output columns are exactly zero because
    # bh is zero-padded; unpack_outputs relies on column layout [0:E|E:E+C]).
    wh = jnp.concatenate([wm, wi], axis=1)                   # (H2, E+C)
    bh = jnp.concatenate([bm, bi], axis=1)                   # (1, E+C)
    whp = jnp.pad(wh, ((0, h2p - h2), (0, houtp - (e + c)))).astype(compute_dtype)
    bhp = jnp.pad(bh, ((0, 0), (0, houtp - (e + c))))

    arrays = dict(w1=w1p, b1=b1p, w2=w2p, b2=b2p, wh=whp, bh=bhp)
    meta = dict(d_in=d_in, emb_dim=e, ind_dim=c, hout_p=houtp)
    return arrays, meta


def _choose_tile(n, tile_n):
    """Row-tile size: multiple of 8, as large as allowed, but guarantee >= 2
    grid steps whenever the batch allows it (v7x dual-TensorCore balance)."""
    tile = min(tile_n, _round_up(max(n, 1), 8))
    if n > 8 and _round_up(n, tile) // tile < 2:
        tile = max(8, _round_up(-(-n // 2), 8))   # split batch ~in half
    return tile


# ----------------------------------------------------------------------------
# Wrapper: batch-tiled pallas_call with VMEM-resident weights.
# Returns the packed lane-dense slab (n_pad, hout_p); slice with
# unpack_outputs() inside the consumer's jit (avoids a second HBM pass).
# ----------------------------------------------------------------------------
def mapper_block_forward(feat, packed, *, tile_n=512, out_dtype=jnp.bfloat16,
                         vmem_limit_bytes=40 * 1024 * 1024):
    n, d_in = feat.shape
    w1, b1 = packed["w1"], packed["b1"]
    w2, b2 = packed["w2"], packed["b2"]
    wh, bh = packed["wh"], packed["bh"]
    assert d_in == w1.shape[0], "feat width must match packed shared layer 1"
    h1p = w1.shape[1]
    h2p = w2.shape[1]
    hout_p = wh.shape[1]

    tile = _choose_tile(n, tile_n)
    n_pad = _round_up(n, tile)
    feat_p = jnp.pad(feat, ((0, n_pad - n), (0, 0))) if n_pad != n else feat
    num_tiles = n_pad // tile
    grid = (num_tiles,)

    # Streamed row tiles: deepen pipelining once there are enough steps.
    if num_tiles >= 3:
        feat_spec = pl.BlockSpec((tile, d_in), lambda i: (i, 0),
                                 pipeline_mode=pl.Buffered(3))
    else:
        feat_spec = pl.BlockSpec((tile, d_in), lambda i: (i, 0))

    def resident_spec(arr):
        # full-array block, constant index -> DMA'd once, stays in VMEM;
        # single-buffered (no point double-buffering a constant block).
        return pl.BlockSpec(arr.shape, lambda i: (0, 0),
                            pipeline_mode=pl.Buffered(1))

    out_spec = pl.BlockSpec((tile, hout_p), lambda i: (i, 0))

    out_itemsize = jnp.dtype(out_dtype).itemsize
    flops = 2 * n_pad * (d_in * h1p + h1p * h2p + h2p * hout_p)
    bytes_accessed = (feat_p.size * feat_p.dtype.itemsize
                      + sum(a.size * a.dtype.itemsize
                            for a in (w1, b1, w2, b2, wh, bh))
                      + n_pad * hout_p * out_itemsize)

    out = pl.pallas_call(
        mapper_block_kernel,
        out_shape=jax.ShapeDtypeStruct((n_pad, hout_p), out_dtype),
        grid=grid,
        in_specs=[
            feat_spec,               # feat rows (pipelined)
            resident_spec(w1), resident_spec(b1),
            resident_spec(w2), resident_spec(b2),
            resident_spec(wh), resident_spec(bh),
        ],
        out_specs=out_spec,          # single lane-dense output slab
        compiler_params=pltpu.CompilerParams(
            dimension_semantics=("parallel",),
            vmem_limit_bytes=vmem_limit_bytes,
        ),
        cost_estimate=pl.CostEstimate(flops=flops, transcendentals=0,
                                      bytes_accessed=bytes_accessed),
    )(feat_p, w1, b1, w2, b2, wh, bh)

    return out


def unpack_outputs(slab, n, emb_dim, ind_dim):
    """Slice (emb, scores) out of the packed slab.  Call inside the same jit
    as the consumer so the slices fuse instead of making a second HBM pass."""
    emb = slab[:n, :emb_dim]
    scores = slab[:n, emb_dim:emb_dim + ind_dim]
    return emb, scores


# ----------------------------------------------------------------------------
# Synthetic parameter init matching build_mlp shapes.
# ----------------------------------------------------------------------------
def init_params(key, shared_dims, map_dims, ind_dims):
    ks = jax.random.split(key, 8)

    def lin(kw, kb, d_in, d_out):
        scale = 1.0 / jnp.sqrt(jnp.float32(d_in))
        w = jax.random.uniform(kw, (d_in, d_out), jnp.float32, -scale, scale)
        b = jax.random.uniform(kb, (1, d_out), jnp.float32, -scale, scale)
        return w, b

    w1, b1 = lin(ks[0], ks[1], shared_dims[0], shared_dims[1])
    w2, b2 = lin(ks[2], ks[3], shared_dims[1], shared_dims[2])
    wm, bm = lin(ks[4], ks[5], map_dims[0], map_dims[1])
    wi, bi = lin(ks[6], ks[7], ind_dims[0], ind_dims[1])
    return dict(w1=w1, b1=b1, w2=w2, b2=b2, wm=wm, bm=bm, wi=wi, bi=bi)


def reference_forward(feat, p):
    h = jnp.maximum(feat @ p["w1"] + p["b1"], 0.0)
    h = jnp.maximum(h @ p["w2"] + p["b2"], 0.0)
    return h @ p["wm"] + p["bm"], h @ p["wi"] + p["bi"]


if __name__ == "__main__":
    key = jax.random.PRNGKey(0)
    k_feat, k_params = jax.random.split(key)

    # Small, module-consistent shapes.
    batch = 16
    shared_dims = [32, 64, 32]   # shared MLP (with_last_act=True)
    map_dims = [32, 16]          # mapper head -> emb
    ind_dims = [32, 8]           # indicator head -> scores

    feat = jax.random.normal(k_feat, (batch, shared_dims[0]), jnp.float32)
    params = init_params(k_params, shared_dims, map_dims, ind_dims)
    emb_ref, scores_ref = reference_forward(feat, params)

    # ---- default performance config: bf16 MXU operands, bf16 output slab ----
    packed_bf16, meta = pack_params(params)              # compute_dtype=bf16
    e, c = meta["emb_dim"], meta["ind_dim"]

    @jax.jit
    def fwd_bf16(feat, packed):
        slab = mapper_block_forward(feat, packed, tile_n=512,
                                    out_dtype=jnp.bfloat16)
        # slicing stays inside the same jit as the (toy) consumer
        return unpack_outputs(slab, feat.shape[0], e, c)

    emb_b, scores_b = fwd_bf16(feat, packed_bf16)
    jax.block_until_ready((emb_b, scores_b))
    assert emb_b.shape == emb_ref.shape and scores_b.shape == scores_ref.shape
    assert jnp.allclose(emb_b.astype(jnp.float32), emb_ref, atol=1e-1, rtol=5e-2)
    assert jnp.allclose(scores_b.astype(jnp.float32), scores_ref, atol=1e-1, rtol=5e-2)

    # ---- f32 parity config: exact match with the reference ----
    packed_f32, _ = pack_params(params, compute_dtype=jnp.float32)

    @jax.jit
    def fwd_f32(feat, packed):
        slab = mapper_block_forward(feat, packed, tile_n=512,
                                    out_dtype=jnp.float32)
        return unpack_outputs(slab, feat.shape[0], e, c)

    emb_f, scores_f = fwd_f32(feat, packed_f32)
    jax.block_until_ready((emb_f, scores_f))
    assert jnp.allclose(emb_f, emb_ref, atol=1e-5, rtol=1e-5)
    assert jnp.allclose(scores_f, scores_ref, atol=1e-5, rtol=1e-5)

    print("KERNEL_OK")
</pallas_src>

<mosaic_0001>
module attributes {stable_mosaic.version = 11 : i64} {
  func.func @mapper_block_kernel(%arg0: i32, %arg1: memref<8x32xf32, #tpu.memory_space<vmem>>, %arg2: memref<32x128xbf16, #tpu.memory_space<vmem>>, %arg3: memref<1x128xf32, #tpu.memory_space<vmem>>, %arg4: memref<128x128xbf16, #tpu.memory_space<vmem>>, %arg5: memref<1x128xf32, #tpu.memory_space<vmem>>, %arg6: memref<128x128xbf16, #tpu.memory_space<vmem>>, %arg7: memref<1x128xf32, #tpu.memory_space<vmem>>, %arg8: memref<8x128xbf16, #tpu.memory_space<vmem>>) attributes {dimension_semantics = [#tpu.dimension_semantics<parallel>], iteration_bounds = array<i64: 2>, scalar_prefetch = 0 : i64, scratch_operands = 0 : i64, tpu.core_type = #tpu.core_type<tc>, window_params = [{transform_indices = @transform_0, window_bounds = array<i64: 8, 32>}, {pipeline_mode = #tpu.pipeline_mode<synchronous>, transform_indices = @transform_1, window_bounds = array<i64: 32, 128>}, {pipeline_mode = #tpu.pipeline_mode<synchronous>, transform_indices = @transform_2, window_bounds = array<i64: 1, 128>}, {pipeline_mode = #tpu.pipeline_mode<synchronous>, transform_indices = @transform_3, window_bounds = array<i64: 128, 128>}, {pipeline_mode = #tpu.pipeline_mode<synchronous>, transform_indices = @transform_4, window_bounds = array<i64: 1, 128>}, {pipeline_mode = #tpu.pipeline_mode<synchronous>, transform_indices = @transform_5, window_bounds = array<i64: 128, 128>}, {pipeline_mode = #tpu.pipeline_mode<synchronous>, transform_indices = @transform_6, window_bounds = array<i64: 1, 128>}, {transform_indices = @transform_7, window_bounds = array<i64: 8, 128>}]} {
    %c0 = arith.constant 0 : index
    %c0_0 = arith.constant 0 : index
    %0 = vector.load %arg1[%c0, %c0_0] : memref<8x32xf32, #tpu.memory_space<vmem>>, vector<8x32xf32>
    %1 = arith.truncf %0 : vector<8x32xf32> to vector<8x32xbf16>
    %c0_1 = arith.constant 0 : index
    %c0_2 = arith.constant 0 : index
    %2 = vector.load %arg2[%c0_1, %c0_2] : memref<32x128xbf16, #tpu.memory_space<vmem>>, vector<32x128xbf16>
    %cst = arith.constant dense<0.000000e+00> : vector<8x128xf32>
    %3 = tpu.matmul %1, %2, %cst {dimension_numbers = #tpu.dot_dimension_numbers<[1], [0], [0], [1], [0, 0, 1, 1], [], []>} : vector<8x32xbf16>, vector<32x128xbf16>, vector<8x128xf32> -> vector<8x128xf32>
    %c0_3 = arith.constant 0 : index
    %c0_4 = arith.constant 0 : index
    %4 = vector.load %arg3[%c0_3, %c0_4] : memref<1x128xf32, #tpu.memory_space<vmem>>, vector<1x128xf32>
    %5 = vector.broadcast %4 : vector<1x128xf32> to vector<8x128xf32>
    %6 = arith.addf %3, %5 : vector<8x128xf32>
    %cst_5 = arith.constant 0.000000e+00 : f32
    %7 = vector.broadcast %cst_5 : f32 to vector<8x128xf32>
    %8 = arith.maximumf %6, %7 : vector<8x128xf32>
    %9 = arith.truncf %8 : vector<8x128xf32> to vector<8x128xbf16>
    %c0_6 = arith.constant 0 : index
    %c0_7 = arith.constant 0 : index
    %10 = vector.load %arg4[%c0_6, %c0_7] : memref<128x128xbf16, #tpu.memory_space<vmem>>, vector<128x128xbf16>
    %cst_8 = arith.constant dense<0.000000e+00> : vector<8x128xf32>
    %11 = tpu.matmul %9, %10, %cst_8 {dimension_numbers = #tpu.dot_dimension_numbers<[1], [0], [0], [1], [0, 0, 1, 1], [], []>} : vector<8x128xbf16>, vector<128x128xbf16>, vector<8x128xf32> -> vector<8x128xf32>
    %c0_9 = arith.constant 0 : index
    %c0_10 = arith.constant 0 : index
    %12 = vector.load %arg5[%c0_9, %c0_10] : memref<1x128xf32, #tpu.memory_space<vmem>>, vector<1x128xf32>
    %13 = vector.broadcast %12 : vector<1x128xf32> to vector<8x128xf32>
    %14 = arith.addf %11, %13 : vector<8x128xf32>
    %cst_11 = arith.constant 0.000000e+00 : f32
    %15 = vector.broadcast %cst_11 : f32 to vector<8x128xf32>
    %16 = arith.maximumf %14, %15 : vector<8x128xf32>
    %17 = arith.truncf %16 : vector<8x128xf32> to vector<8x128xbf16>
    %c0_12 = arith.constant 0 : index
    %c0_13 = arith.constant 0 : index
    %18 = vector.load %arg6[%c0_12, %c0_13] : memref<128x128xbf16, #tpu.memory_space<vmem>>, vector<128x128xbf16>
    %cst_14 = arith.constant dense<0.000000e+00> : vector<8x128xf32>
    %19 = tpu.matmul %17, %18, %cst_14 {dimension_numbers = #tpu.dot_dimension_numbers<[1], [0], [0], [1], [0, 0, 1, 1], [], []>} : vector<8x128xbf16>, vector<128x128xbf16>, vector<8x128xf32> -> vector<8x128xf32>
    %c0_15 = arith.constant 0 : index
    %c0_16 = arith.constant 0 : index
    %20 = vector.load %arg7[%c0_15, %c0_16] : memref<1x128xf32, #tpu.memory_space<vmem>>, vector<1x128xf32>
    %21 = vector.broadcast %20 : vector<1x128xf32> to vector<8x128xf32>
    %22 = arith.addf %19, %21 : vector<8x128xf32>
    %23 = arith.truncf %22 : vector<8x128xf32> to vector<8x128xbf16>
    %c0_17 = arith.constant 0 : index
    %c0_18 = arith.constant 0 : index
    %24 = vector.load %arg8[%c0_17, %c0_18] : memref<8x128xbf16, #tpu.memory_space<vmem>>, vector<8x128xbf16>
    tpu.vector_store %arg8[%c0_17, %c0_18], %23 {strides = array<i32>} : memref<8x128xbf16, #tpu.memory_space<vmem>>, vector<8x128xbf16>,
    return
  }
  func.func @transform_0(%arg0: i32) -> (i32, i32) {
    %c0_i32 = arith.constant 0 : i32
    %c0_i32_0 = arith.constant 0 : i32
    return %arg0, %c0_i32 : i32, i32
  }
  func.func @transform_1(%arg0: i32) -> (i32, i32) {
    %c0_i32 = arith.constant 0 : i32
    %c0_i32_0 = arith.constant 0 : i32
    %c0_i32_1 = arith.constant 0 : i32
    return %c0_i32, %c0_i32_0 : i32, i32
  }
  func.func @transform_2(%arg0: i32) -> (i32, i32) {
    %c0_i32 = arith.constant 0 : i32
    %c0_i32_0 = arith.constant 0 : i32
    %c0_i32_1 = arith.constant 0 : i32
    return %c0_i32, %c0_i32_0 : i32, i32
  }
  func.func @transform_3(%arg0: i32) -> (i32, i32) {
    %c0_i32 = arith.constant 0 : i32
    %c0_i32_0 = arith.constant 0 : i32
    %c0_i32_1 = arith.constant 0 : i32
    return %c0_i32, %c0_i32_0 : i32, i32
  }
  func.func @transform_4(%arg0: i32) -> (i32, i32) {
    %c0_i32 = arith.constant 0 : i32
    %c0_i32_0 = arith.constant 0 : i32
    %c0_i32_1 = arith.constant 0 : i32
    return %c0_i32, %c0_i32_0 : i32, i32
  }
  func.func @transform_5(%arg0: i32) -> (i32, i32) {
    %c0_i32 = arith.constant 0 : i32
    %c0_i32_0 = arith.constant 0 : i32
    %c0_i32_1 = arith.constant 0 : i32
    return %c0_i32, %c0_i32_0 : i32, i32
  }
  func.func @transform_6(%arg0: i32) -> (i32, i32) {
    %c0_i32 = arith.constant 0 : i32
    %c0_i32_0 = arith.constant 0 : i32
    %c0_i32_1 = arith.constant 0 : i32
    return %c0_i32, %c0_i32_0 : i32, i32
  }
  func.func @transform_7(%arg0: i32) -> (i32, i32) {
    %c0_i32 = arith.constant 0 : i32
    %c0_i32_0 = arith.constant 0 : i32
    return %arg0, %c0_i32 : i32, i32
  }
}

</mosaic_0001>

<bundles_post_ra>
// kernel: fwd_bf16.1
= control target key start
LH: loop header
LB: loop body
LE: loop exit
PB: predicated region body
PF: predicated region fallthrough
CT: control target
= control target key end

     0   :  { %12 = vsyncpa [#allocation3], 0  ;;  %s1381_s0 = inlined_call_operand.hbm [shape: f32[16,32], index: 0, kind: input, shape index: {}]   ;;  %s1382_s1 = inlined_call_operand.hbm [shape: bf16[32,128], index: 1, kind: input, shape index: {}]   ;;  %s1383_s2 = inlined_call_operand.vmem [shape: f32[1,128], index: 2, kind: input, shape index: {}]   ;;  %s1384_s3 = inlined_call_operand.hbm [shape: bf16[128,128], index: 3, kind: input, shape index: {}]   ;;  %s1385_s4 = inlined_call_operand.vmem [shape: f32[1,128], index: 4, kind: input, shape index: {}]   ;;  %s1386_s5 = inlined_call_operand.hbm [shape: bf16[128,128], index: 5, kind: input, shape index: {}]   ;;  %s1387_s6 = inlined_call_operand.vmem [shape: f32[1,128], index: 6, kind: input, shape index: {}]   ;;  %s1388_s7 = inlined_call_operand.vmem [shape: bf16[16,128], index: 7, kind: output, shape index: {}]  }
   0x1   :  { %14 = vsyncpa [#allocation3 + $0x1], 0 }
   0x2   :  { %15 = vsyncpa [#allocation5], 0 }
   0x3   :  { %16 = vsyncpa [#allocation8], 0  ;;  %s1135_s24 = smov 0   ;;  %s1137_s25 = smov 0  }
   0x4   :  { %s1139_s26 = smov 0   ;;  %s1141_s27 = smov 0  }
   0x5 LB: > { %s1154_s28 = sadd.s32 4294967295, %s1085_s27   ;;  %p42_p0 = scmp.ne.s32.totalorder %s1077_s25, %s1073_s24  ;;  %s1085_s27 = sphi %s1141_s27, %s1406_s27   ;;  %s1081_s26 = sphi %s1139_s26, %s1405_s26   ;;  %s1077_s25 = sphi %s1137_s25, %s1404_s25   ;;  %s1073_s24 = sphi %s1135_s24, %s1403_s24  }
   0x6   : > { %p1389_p1 = scmp.eq.s32.totalorder %s1154_s28, 0  ;;  %p731_p2 = scmp.ge.s32.totalorder %s1085_s27, 1 }
   0x7   : > { %p205_p3 = scmp.lt.s32.totalorder %s1085_s27, 3  ;;  %s1087_s8 = smov [#allocation4]  }
   0x8   : > { %p1162_p4 = por %p1389_p1, %p42_p0  ;;  %s217_s9 = sshll.u32 %s1087_s8, 4  ;;  %s1170_s9 = int_to_ptr.vmem [resolvable:$true] %s217_s9 }
   0x9   : > { %p1166_p5 = pnand %p731_p2, %p205_p3  ;;  %s1088_s11 = smov [#allocation6]  }
   0xa   : > { %s1392_s29 = scalar_select %p1162_p4, 1, 0 }
   0xb   : > { %s1393_s30 = scalar_select %p1166_p5, 1, 0 }
   0xc   : > { %p851_p6 = pneg %p1166_p5  ;;  %s233_s12 = sshll.u32 %s1088_s11, 4  ;;  %s1180_s12 = int_to_ptr.vmem [resolvable:$true] %s233_s12 }
   0xd   : > { %s1089_s13 = smov [#allocation7]   ;;  %s929_s17 = scalar_lea.hbm %s1382_s1, 256 }
   0xe   : > { %p1176_p7 = pnand %p851_p6, %p1389_p1  ;;  %s1182_s14 = sshll.u32 %s1089_s13, 4  ;;  %s250_s14 = int_to_ptr.vmem [resolvable:$true] %s1182_s14 }
   0xf   : > { %p930_p8 = scmp.ne.s32.totalorder %s1382_s1, %s929_s17  ;;  %p936_p12 = scmp.lt.u32.totalorder %s929_s17, %s1382_s1 }
  0x10   : > { %p1192_p9 = pneg %p1176_p7 }
  0x12   : > { %p932_p10 = pnand %p1192_p9, %p930_p8 }
  0x14   : > { %p933_p11 = pneg %p932_p10 }
  0x16   : > { %p938_p13 = pnand %p936_p12, %p933_p11 }
  0x18   : > { %941 = shalt.err (!%p938_p13)
}
  0x19   : > { %s942_s23 = scalar_lea.vmem %s1170_s9, 256  ;;  %p950_p6 = scmp.lt.s32.totalorder %s1170_s9, %s1170_s9 }
  0x1a   : > { %p943_p0 = scmp.ne.s32.totalorder %s1170_s9, %s942_s23  ;;  %p951_p1 = scmp.lt.s32.totalorder %s942_s23, %s942_s23 }
  0x1c   : > { %p945_p2 = pnand %p943_p0, %p1192_p9  ;;  %p952_p8 = por %p951_p1, %p950_p6 }
  0x1e   : > { %p946_p3 = pneg %p945_p2 }
  0x20   : > { %p953_p10 = pnand %p952_p8, %p946_p3 }
  0x22   : > { %956 = shalt.err (!%p953_p10)
}
  0x23   : > { %s1090_s24 = smov 64   ;;  %s1091_s8 = smov 4  }
  0x24   : > { %854 = dma.hbm_to_vmem [thread:$0]  (!%p1176_p7), %s1382_s1, 256, %s1170_s9, [#allocation5], %s1090_s24, %s1090_s24, %s1091_s8  }
  0x25   : > { %s957_s17 = scalar_lea.hbm %s1384_s3, 1024 }
  0x26   : > { %p958_p1 = scmp.ne.s32.totalorder %s1384_s3, %s957_s17  ;;  %p964_p13 = scmp.lt.u32.totalorder %s957_s17, %s1384_s3 }
  0x28   : > { %p960_p11 = pnand %p958_p1, %p1192_p9 }
  0x2a   : > { %p961_p12 = pneg %p960_p11 }
  0x2c   : > { %p966_p0 = pnand %p964_p13, %p961_p12 }
  0x2e   : > { %969 = shalt.err (!%p966_p0)
}
  0x2f   : > { %s970_s9 = scalar_lea.vmem %s1180_s12, 1024  ;;  %p978_p8 = scmp.lt.s32.totalorder %s1180_s12, %s1180_s12 }
  0x30   : > { %p971_p2 = scmp.ne.s32.totalorder %s1180_s12, %s970_s9  ;;  %p979_p10 = scmp.lt.s32.totalorder %s970_s9, %s970_s9 }
  0x32   : > { %p973_p3 = pnand %p971_p2, %p1192_p9  ;;  %p980_p1 = por %p979_p10, %p978_p8 }
  0x34   : > { %p974_p6 = pneg %p973_p3 }
  0x36   : > { %p981_p11 = pnand %p980_p1, %p974_p6 }
  0x38   : > { %984 = shalt.err (!%p981_p11)
}
  0x39   : > { %857 = dma.hbm_to_vmem [thread:$0]  (!%p1176_p7), %s1384_s3, 1024, %s1180_s12, [#allocation5], %s1090_s24, %s1090_s24, %s1091_s8  }
  0x3a   : > { %s985_s16 = scalar_lea.hbm %s1386_s5, 1024 }
  0x3b   : > { %p986_p12 = scmp.ne.s32.totalorder %s1386_s5, %s985_s16  ;;  %p992_p2 = scmp.lt.u32.totalorder %s985_s16, %s1386_s5 }
  0x3d   : > { %p988_p13 = pnand %p986_p12, %p1192_p9 }
  0x3f   : > { %p989_p0 = pneg %p988_p13 }
  0x41   : > { %p994_p3 = pnand %p992_p2, %p989_p0 }
  0x43   : > { %997 = shalt.err (!%p994_p3)
}
  0x44   : > { %s998_s22 = scalar_lea.vmem %s250_s14, 1024  ;;  %p1006_p1 = scmp.lt.s32.totalorder %s250_s14, %s250_s14 }
  0x45   : > { %p999_p6 = scmp.ne.s32.totalorder %s250_s14, %s998_s22  ;;  %p1007_p11 = scmp.lt.s32.totalorder %s998_s22, %s998_s22 }
  0x47   : > { %p1001_p8 = pnand %p999_p6, %p1192_p9  ;;  %p1008_p4 = por %p1007_p11, %p1006_p1 }
  0x49   : > { %p1002_p10 = pneg %p1001_p8 }
  0x4b   : > { %p1009_p5 = pnand %p1008_p4, %p1002_p10 }
  0x4d   : > { %1012 = shalt.err (!%p1009_p5)
}
  0x4e   : > { %860 = dma.hbm_to_vmem [thread:$0]  (!%p1176_p7), %s1386_s5, 1024, %s250_s14, [#allocation8], %s1090_s24, %s1090_s24, %s1091_s8  }
  0x4f   : > { %s1265_s20 = sadd.s32 1, %s1085_s27   ;;  %s29_s23 = sadd.s32 1, %s1081_s26 }
  0x50   : > { %s26_s10 = ssub.s32 %s1085_s27, %s1265_s20  ;;  %p36_p5 = scmp.ne.s32.totalorder %s1081_s26, %s1077_s25 }
  0x51   : > { %p27_p4 = scmp.eq.s32.totalorder %s26_s10, 0  ;;  %p37_p9 = scmp.eq.s32.totalorder %s1085_s27, 0 }
  0x52   : > { %p868_p12 = scmp.lt.s32.totalorder %s1085_s27, 2  ;;  %s266_s13 = sand.u32 1, %s1081_s26  }
  0x53   : > { %s1275_s11 = scalar_select %p27_p4, %s1081_s26, %s29_s23  }
  0x54   : > { %p38_p13 = por %p37_p9, %p36_p5  ;;  %s736_s15 = sshll.u32 %s266_s13, 3 }
  0x55   : > { %s737_s16 = sshll.u32 %s1085_s27, 7  ;;  %s270_s14 = scalar_lea.vmem [#allocation2], %s736_s15 }
  0x56   : > { %s1282_s19 = scalar_lea.hbm %s1381_s0, %s737_s16  ;;  %s277_s24 = sshll.u32 %s270_s14, 4  ;;  %s1284_s24 = int_to_ptr.vmem [resolvable:$true] %s277_s24 }
  0x57   : > { %p1286_p7 = pnand %p868_p12, %p38_p13  ;;  %s267_s27 = scalar_lea.sflag [#allocation3], %s266_s13 }
  0x58   : > { %s1013_s21 = scalar_lea.hbm %s1282_s19, 128  ;;  %s1018_s9 = scalar_lea.hbm %s1381_s0, 256 }
  0x59   : > { %p1014_p0 = scmp.ne.s32.totalorder %s1282_s19, %s1013_s21  ;;  %p1015_p2 = pneg %p1286_p7 }
  0x5a   : > { %p1019_p8 = scmp.lt.u32.totalorder %s1282_s19, %s1381_s0  ;;  %p1020_p10 = scmp.lt.u32.totalorder %s1018_s9, %s1013_s21 }
  0x5b   : > { %p1016_p3 = pnand %p1015_p2, %p1014_p0  ;;  %p1022_p11 = scmp.lt.u32.totalorder %s1013_s21, %s1282_s19 }
  0x5c   : > { %p1021_p1 = por %p1020_p10, %p1019_p8 }
  0x5d   : > { %p1017_p6 = pneg %p1016_p3 }
  0x5e   : > { %p1023_p4 = por %p1022_p11, %p1021_p1 }
  0x60   : > { %p1024_p5 = pnand %p1023_p4, %p1017_p6 }
  0x62   : > { %1027 = shalt.err (!%p1024_p5)
}
  0x63   : > { %s1028_s13 = scalar_lea.vmem %s1284_s24, 128  ;;  %s1092_s15 = smov [#allocation2]  }
  0x64   : > { %p1029_p9 = scmp.ne.s32.totalorder %s1284_s24, %s1028_s13  ;;  %s1033_s16 = sshll.u32 %s1092_s15, 4  ;;  %s1034_s16 = int_to_ptr.vmem [resolvable:$false] %s1033_s16 }
  0x65   : > { %s1035_s17 = scalar_lea.vmem %s1034_s16, 256  ;;  %p1036_p0 = scmp.lt.s32.totalorder %s1284_s24, %s1034_s16 }
  0x66   : > { %p1031_p12 = pnand %p1029_p9, %p1015_p2  ;;  %p1037_p3 = scmp.lt.s32.totalorder %s1035_s17, %s1028_s13 }
  0x68   : > { %p1032_p13 = pneg %p1031_p12  ;;  %p1038_p8 = por %p1037_p3, %p1036_p0 }
  0x6a   : > { %p1039_p10 = pnand %p1038_p8, %p1032_p13 }
  0x6c   : > { %1042 = shalt.err (!%p1039_p10)
}
  0x6d   : > { %864 = dma.hbm_to_vmem [thread:$0]  (!%p1286_p7), %s1282_s19, 128, %s1284_s24, %s267_s27  }
  0x6e   : > { %p1397_p6 = scmp.ne.s32.totalorder %s1393_s30, 0 }
  0x6f   : > { %s288_s18 = sand.u32 (!%p1397_p6), 1, %s1077_s25   ;;  %p1398_p2 = scmp.ne.s32.totalorder (!%p1397_p6), %s1392_s29, 0 }
  0x70   : > { %286 = sbr.rel (%p1397_p6) target bundleno = 789 (0x315), region = 48  ;;  %s739_s14 = sshll.u32 (!%p1397_p6), %s288_s18, 3 }
  0x71   : > { %s289_s21 = scalar_lea.sflag (!%p1397_p6), [#allocation3], %s288_s18  ;;  %s292_s22 = scalar_lea.vmem (!%p1397_p6), [#allocation2], %s739_s14 }
  0x77   : > { %1060 = dma.done.wait (%p1398_p2), %s289_s21, 128  }
  0x78   : > { %1062 = vsyncadd (%p1398_p2), %s289_s21, 4294967168  ;;  %p1399_p1 = scmp.eq.s32.totalorder %s1154_s28, 0 }
  0x7a   : > { %1064 = dma.done.wait (%p1399_p1), [#allocation5], 1280   ;;  %p1400_p11 = pmov %p1399_p1 }
  0x7b   : > { %p1401_p7 = pmov %p1399_p1 }
  0x7c   : > { %1066 = vsyncadd (%p1400_p11), [#allocation5], 4294966016 }
  0x7d   : > { %1068 = dma.done.wait (%p1401_p7), [#allocation8], 1024   ;;  %p1402_p4 = pmov %p1399_p1 }
  0x7e   : > { %v1093_v0 = vmov 0.0   ;;  %vm1094_vm0 = vmmov 0   ;;  %v911_v1 = vld [vmem:[#allocation4] sm:$0xff]   ;;  %v912_v2 = vld [vmem:[#allocation4 + $0x8] sm:$0xff]   ;;  %v339_v3 = vld [vmem:[%s292_s22] sm:$0xff]  ;;  %vm364_vm1 = vcmask 261120  }
  0x7f   : > { %1070 = vsyncadd (%p1402_p4), [#allocation8], 4294966272  ;;  %789 = vmatprep.subr.bf16.mxu0 %v1093_v0  ;;  %793 = vmatprep.mubr.msk.bf16.mxu0 %vm1094_vm0, %v1093_v0  ;;  %v913_v4 = vld [vmem:[#allocation6] sm:$0xff]   ;;  %v340_v5 = vpack.c.bf16 %v339_v3, %v339_v3  ;;  %v914_v6 = vld [vmem:[#allocation6 + $0x8] sm:$0xff]   ;;  %p334_p5 = scmp.lt.s32.totalorder %s1154_s28, 1 }
  0x80   : > { %797 = vmatprep.subr.bf16.mxu1 %v1093_v0  ;;  %813 = vmatprep.mubr.msk.bf16.mxu1 %vm1094_vm0, %v1093_v0  ;;  %v915_v7 = vld [vmem:[#allocation6 + $0x10] sm:$0xff]   ;;  %v916_v8 = vld [vmem:[#allocation6 + $0x18] sm:$0xff]   ;;  %v917_v9 = vld [vmem:[#allocation6 + $0x20] sm:$0xff]  }
  0x81   : > { %790 = vmatpush3.bf16.msra.mxu0 %v911_v1  ;;  %798 = vmatpush3.bf16.msra.mxu1 %v913_v4  ;;  %v918_v10 = vld [vmem:[#allocation6 + $0x28] sm:$0xff]   ;;  %v919_v11 = vld [vmem:[#allocation6 + $0x30] sm:$0xff]   ;;  %v920_v12 = vld [vmem:[#allocation6 + $0x38] sm:$0xff]   ;;  %s1408_s28 = smov (!%p334_p5, %s1154_s28), 1 }
  0x82   : > { %791 = vmatprep.subr.bf16.mxu0 %v1093_v0  ;;  %799 = vmatprep.subr.bf16.mxu1 %v1093_v0  ;;  %v921_v13 = vld [vmem:[#allocation7] sm:$0xff]   ;;  %v922_v14 = vld [vmem:[#allocation7 + $0x8] sm:$0xff]   ;;  %v923_v15 = vld [vmem:[#allocation7 + $0x10] sm:$0xff]   ;;  %s743_s12 = sshll.u32 %s1408_s28, 2 }
  0x83   : > { %v924_v16 = vld [vmem:[#allocation7 + $0x18] sm:$0xff]   ;;  %v925_v17 = vld [vmem:[#allocation7 + $0x20] sm:$0xff]   ;;  %v926_v18 = vld [vmem:[#allocation7 + $0x28] sm:$0xff]   ;;  %s337_s23 = scalar_lea.vmem %s1388_s7, %s743_s12 }
  0x84   : > { %v744_v19 = vld [vmem:[%s1383_s2] ss:$0 sm:$0xff]  ;;  %v927_v27 = vld [vmem:[#allocation7 + $0x30] sm:$0xff]  }
  0x85   : > { %792 = vmatpush3.bf16.msra.mxu0 %v912_v2  ;;  %800 = vmatpush3.bf16.msra.mxu1 %v914_v6  ;;  %v928_v28 = vld [vmem:[#allocation7 + $0x38] sm:$0xff]  }
  0x86   : > { %817 = vmatprep.subr.bf16.mxu0 %v1093_v0  ;;  %801 = vmatprep.subr.bf16.mxu1 %v1093_v0  ;;  %v748_v29 = vld [vmem:[%s1385_s4] ss:$0 sm:$0xff] }
  0x87   : > { %v757_v37 = vld [vmem:[%s1387_s6] ss:$0 sm:$0xff] }
  0x88   : > { %794 = vmatmul.mubr.msk.bf16.vlgmr.msra.gmra.mrb[0].mxu0 %vm364_vm1, %v340_v5 }
  0x89   : > { %833 = vmatprep.mubr.msk.bf16.mxu0 %vm1094_vm0, %v1093_v0  ;;  %802 = vmatpush3.bf16.msra.mxu1 %v915_v7 }
  0x8a   : > { %803 = vmatprep.subr.bf16.mxu1 %v1093_v0  ;;  %818 = vmatpush3.bf16.msra.mxu0 %v921_v13 }
  0x8b   : > { %819 = vmatprep.subr.bf16.mxu0 %v1093_v0 }
  0x8d   : > { %804 = vmatpush3.bf16.msra.mxu1 %v916_v8 }
  0x8e   : > { %805 = vmatprep.subr.bf16.mxu1 %v1093_v0  ;;  %820 = vmatpush3.bf16.msra.mxu0 %v922_v14 }
  0x8f   : > { %821 = vmatprep.subr.bf16.mxu0 %v1093_v0 }
  0x91   : > { %806 = vmatpush3.bf16.msra.mxu1 %v917_v9 }
  0x92   : > { %807 = vmatprep.subr.bf16.mxu1 %v1093_v0  ;;  %822 = vmatpush3.bf16.msra.mxu0 %v923_v15 }
  0x93   : > { %823 = vmatprep.subr.bf16.mxu0 %v1093_v0 }
  0x95   : > { %808 = vmatpush3.bf16.msra.mxu1 %v918_v10 }
  0x96   : > { %809 = vmatprep.subr.bf16.mxu1 %v1093_v0  ;;  %824 = vmatpush3.bf16.msra.mxu0 %v924_v16 }
  0x97   : > { %825 = vmatprep.subr.bf16.mxu0 %v1093_v0 }
  0x99   : > { %810 = vmatpush3.bf16.msra.mxu1 %v919_v11 }
  0x9a   : > { %811 = vmatprep.subr.bf16.mxu1 %v1093_v0  ;;  %826 = vmatpush3.bf16.msra.mxu0 %v925_v17 }
  0x9b   : > { %827 = vmatprep.subr.bf16.mxu0 %v1093_v0 }
  0x9d   : > { %812 = vmatpush3.bf16.msra.mxu1 %v920_v12 }
  0x9e   : > { %828 = vmatpush3.bf16.msra.mxu0 %v926_v18 }
  0x9f   : > { %829 = vmatprep.subr.bf16.mxu0 %v1093_v0 }
  0xa2   : > { %830 = vmatpush3.bf16.msra.mxu0 %v927_v27 }
  0xa3   : > { %831 = vmatprep.subr.bf16.mxu0 %v1093_v0 }
  0xa6   : > { %832 = vmatpush3.bf16.msra.mxu0 %v928_v28 }
 0x15b   : > { %v402_v20 = vpop.f32.mrb[0].mxu0 }
 0x15c   : > { %v403_v21 = vadd.f32 %v744_v19, %v402_v20  ;;  %v795_v22 = vpop.f32.mrb[1].mxu0 }
 0x15d   : > { %v405_v23 = vpop.f32.mrb[2].mxu0 }
 0x15e   : > { %v408_v24 = vmax.f32 %v403_v21, 0.0  ;;  %v796_v25 = vpop.f32.mrb[3].mxu0 }
 0x160   : > { %v409_v26 = vpack.c.bf16 %v408_v24, %v408_v24 }
 0x162   : > { %814 = vmatmul.mubr.bf16.vlgmr.msra.gmra.mrb[0].mxu1 %v409_v26 }
 0x235   : > { %v515_v30 = vpop.f32.mrb[0].mxu1 }
 0x236   : > { %v516_v31 = vadd.f32 %v748_v29, %v515_v30  ;;  %v815_v32 = vpop.f32.mrb[1].mxu1 }
 0x237   : > { %v518_v33 = vpop.f32.mrb[2].mxu1 }
 0x238   : > { %v521_v34 = vmax.f32 %v516_v31, 0.0  ;;  %v816_v35 = vpop.f32.mrb[3].mxu1 }
 0x23a   : > { %v522_v36 = vpack.c.bf16 %v521_v34, %v521_v34 }
 0x23c   : > { %834 = vmatmul.mubr.bf16.vlgmr.msra.gmra.mrb[4].mxu0 %v522_v36 }
 0x30f   : > { %v628_v38 = vpop.f32.mrb[4].mxu0 }
 0x310   : > { %v629_v39 = vadd.f32 %v757_v37, %v628_v38  ;;  %v835_v40 = vpop.f32.mrb[5].mxu0 }
 0x311   : > { %v631_v41 = vpop.f32.mrb[6].mxu0 }
 0x312   : > { %v634_v42 = vpack.c.bf16 %v629_v39, %v629_v39  ;;  %v836_v43 = vpop.f32.mrb[7].mxu0 }
 0x314   : > { %635 = vst [vmem:[%s337_s23] sm:$0xf] %v634_v42 }
 0x315 PF: > { %p19_p9 = scmp.ge.s32.totalorder %s1265_s20, 4   ;;  %s1403_s24 = smov %s1077_s25 }
 0x316   : > { %s1404_s25 = smov %s1081_s26  ;;  %s1405_s26 = smov %s1275_s11 }
 0x317   : > { %s1406_s27 = smov %s1265_s20  ;;  %21 = sbr.rel (!%p19_p9) target bundleno = 5 (0x5), region = 100 }
 0x31e   :  { %655 = vsyncpa [#allocation3], 1 }
 0x31f   :  { %657 = vsyncpa [#allocation3 + $0x1], 1 }
 0x320   :  { %658 = vsyncpa [#allocation5], 1 }
 0x321   :  { %659 = vsyncpa [#allocation8], 1 }

</bundles_post_ra>
